<compile_context>
chip_gen: v5e
topology: v5e:2x2
jax: 0.10.0
libtpu: 0.0.40
codegen_flags: <defaults>
</compile_context>

<pallas_src>
import functools

import jax
import jax.numpy as jnp
import numpy as np
from jax import lax
from jax.experimental import pallas as pl
from jax.experimental.pallas import tpu as pltpu


_MIB = 1024 * 1024
# Stay under the v5e scoped-VMEM default (16 MiB) with headroom; raise only if needed.
_VMEM_SOFT_BUDGET = 12 * _MIB
# Never request more than 48 MiB: v7x has only 64 MiB physical VMEM per TensorCore.
_VMEM_LIMIT_CAP = 48 * _MIB


# --------------------------------------------------------------------------- #
# In-register replicate-boundary shift (for the non-tiled spatial axes).
# --------------------------------------------------------------------------- #
def _replicate_shift(x, ax, delta, iota_cache):
    """result[..., i, ...] = x[..., clip(i + delta, 0, n-1), ...]."""
    if delta == 0:
        return x
    n = x.shape[ax]
    if n == 1:
        return x
    if ax == x.ndim - 1 and n % 128 == 0:
        # Lane axis, lane-aligned: XLU rotate (otherwise-idle slot) plus a
        # one-column VPU select to replicate the edge.
        rolled = pltpu.roll(x, (-delta) % n, axis=ax)
        key = (x.shape, ax)
        if key not in iota_cache:  # hoisted: JAX does not CSE iota/broadcast
            iota_cache[key] = lax.broadcasted_iota(jnp.int32, x.shape, ax)
        edge = (n - 1) if delta > 0 else 0
        return jnp.where(iota_cache[key] == edge, x, rolled)
    # TODO(synk): extend the roll fast path to the sublane axis (n % 8 == 0)
    # once verified on all target generations; concat is the safe fallback.
    sl = [slice(None)] * x.ndim
    ed = [slice(None)] * x.ndim
    if delta > 0:
        sl[ax] = slice(1, n)
        ed[ax] = slice(n - 1, n)
        return jnp.concatenate([x[tuple(sl)], x[tuple(ed)]], axis=ax)
    sl[ax] = slice(0, n - 1)
    ed[ax] = slice(0, 1)
    return jnp.concatenate([x[tuple(ed)], x[tuple(sl)]], axis=ax)


# --------------------------------------------------------------------------- #
# Pallas kernel for dim >= 2: one (possibly halo-extended) slab per grid step.
# --------------------------------------------------------------------------- #
def _fd_nd_kernel(*refs, dim, dx, order, return_mixed_derivs, has_halo):
    if has_halo:
        lo_ref, u_ref, hi_ref = refs[0], refs[1], refs[2]
        out_refs = refs[3:]
    else:
        u_ref = refs[0]
        out_refs = refs[1:]

    f32 = jnp.float32
    # bf16 inputs: keep shifted windows in bf16 (halves vreg/VMEM footprint on
    # v6e/v7x); final combines still in f32.  Other dtypes staged in f32.
    sdt = jnp.bfloat16 if u_ref.dtype == jnp.bfloat16 else f32
    iota_cache = {}

    def shift(x, ax, d):
        return _replicate_shift(x, ax, d, iota_cache)

    u = u_ref[...].astype(sdt)                    # (T, *spatial[1:])
    T = u.shape[0]
    if has_halo:
        lo = lo_ref[...].astype(sdt)
        hi = hi_ref[...].astype(sdt)
    else:
        lo = u[0:1]
        hi = u[T - 1:T]
    # Halo-extended slab along the leading (grid-tiled) spatial axis.
    u_ext = jnp.concatenate([lo, u, hi], axis=0)  # (T+2, ...)

    ctr = slice(1, T + 1)
    u32 = u.astype(f32)

    def store(i, val):
        out_refs[i][...] = val.astype(out_refs[i].dtype)

    # ---- derivative along the leading axis: pure slices of the halo slab ----
    xp0 = u_ext[2:T + 2].astype(f32)
    xm0 = u_ext[0:T].astype(f32)
    if order == 1:
        store(0, (xp0 - xm0) * (0.5 / dx[0]))
    else:
        store(0, (xp0 - 2.0 * u32 + xm0) * (1.0 / (dx[0] * dx[0])))

    # ---- derivatives along the remaining axes (in-register replicate shifts);
    #      when mixed derivatives are needed, the +/-1 windows are computed on
    #      the halo-extended slab so the mixed terms can reuse them. ----
    base = u_ext if return_mixed_derivs else u
    win = {}
    for a in range(1, dim):
        p = shift(base, a, +1)
        m = shift(base, a, -1)
        if return_mixed_derivs:
            win[a] = (p, m)
            pc = p[ctr].astype(f32)
            mc = m[ctr].astype(f32)
        else:
            pc = p.astype(f32)
            mc = m.astype(f32)
        if order == 1:
            store(a, (pc - mc) * (0.5 / dx[a]))
        else:
            store(a, (pc - 2.0 * u32 + mc) * (1.0 / (dx[a] * dx[a])))

    # ---- mixed second derivatives: d_b = u(+1_b) - u(-1_b), then one +/-1
    #      difference along the other axis (halves the shift count). ----
    if return_mixed_derivs:
        pairs = [(0, 1)] if dim == 2 else [(0, 1), (0, 2), (1, 2)]
        idx = dim
        for (a, b) in pairs:
            scale = 1.0 / (4.0 * dx[a] * dx[b])
            if a == 0:
                p, m = win[b]
                d_ext = p.astype(f32) - m.astype(f32)           # (T+2, ...)
                val = (d_ext[2:T + 2] - d_ext[0:T]) * scale
            else:                                               # (a, b) == (1, 2)
                p, m = win[a]
                d_a = p[ctr].astype(f32) - m[ctr].astype(f32)   # (T, ...)
                val = (shift(d_a, b, +1) - shift(d_a, b, -1)) * scale
            store(idx, val)
            idx += 1


# --------------------------------------------------------------------------- #
# Pallas kernel for dim == 1: rows packed into sublanes, stencil along lanes.
# --------------------------------------------------------------------------- #
def _fd_1d_kernel(u_ref, o_ref, *, dx, order):
    f32 = jnp.float32
    sdt = jnp.bfloat16 if u_ref.dtype == jnp.bfloat16 else f32
    u = u_ref[...].astype(sdt)
    iota_cache = {}
    p = _replicate_shift(u, 1, +1, iota_cache).astype(f32)
    m = _replicate_shift(u, 1, -1, iota_cache).astype(f32)
    if order == 1:
        val = (p - m) * (0.5 / dx)
    else:
        val = (p - 2.0 * u.astype(f32) + m) * (1.0 / (dx * dx))
    o_ref[...] = val.astype(o_ref.dtype)


# --------------------------------------------------------------------------- #
# Module wrapper (mirrors the PyTorch nn.Module interface).
# --------------------------------------------------------------------------- #
class GradientsFiniteDifference:
    def __init__(self, invar, dx, dim=3, order=1, return_mixed_derivs=False,
                 spatial_tile_rows=None):
        self.invar = invar
        self.dim = dim
        self.order = order
        self.return_mixed_derivs = return_mixed_derivs
        # Optional override of the leading-spatial-axis tile (must divide it);
        # None -> auto-selected from the VMEM budget.
        self.spatial_tile_rows = spatial_tile_rows
        if isinstance(dx, (float, int)):
            dx = [float(dx) for _ in range(dim)]
        self.dx = [float(d) for d in dx]
        assert self.order < 3, "Derivatives only upto 2nd order are supported"
        assert len(self.dx) == self.dim, f"Mismatch in {self.dim} and {self.dx}"
        if self.return_mixed_derivs:
            assert self.dim > 1, "Mixed Derivatives only supported for 2D and 3D inputs"
            assert self.order == 2, "Mixed Derivatives not possible for first order derivatives"

    def _num_mixed(self):
        if not self.return_mixed_derivs:
            return 0
        return 1 if self.dim == 2 else 3

    # VMEM working-set estimate for one grid step: double-buffered input
    # (main + halos) and outputs, staged +/-1 windows and f32 temporaries.
    @staticmethod
    def _work_bytes(tile_rows, out_rows, plane, in_itemsize, stage_itemsize, n_out):
        return int(
            2 * (tile_rows + 2) * plane * in_itemsize
            + 2 * n_out * out_rows * plane * in_itemsize
            + 8 * (tile_rows + 2) * plane * stage_itemsize
            + 4 * (tile_rows + 2) * plane * 4)

    def _pick_tile_rows(self, S0, plane, in_itemsize, stage_itemsize, n_out):
        if self.spatial_tile_rows is not None:
            t = int(self.spatial_tile_rows)
            assert S0 % t == 0, f"spatial_tile_rows={t} must divide {S0}"
            return t
        divs = [d for d in range(1, S0 + 1) if S0 % d == 0]
        divs.sort(reverse=True)
        # Prefer >= 2 tiles on non-trivial volumes (pipelining + megacore sharding).
        if S0 * plane * in_itemsize > 2 * _MIB and len(divs) > 1:
            divs = [d for d in divs if d < S0]
        for d in divs:
            if self._work_bytes(d, d, plane, in_itemsize, stage_itemsize,
                                n_out) <= _VMEM_SOFT_BUDGET:
                return d
        return divs[-1]

    # ------------------------------------------------------------------ #
    def __call__(self, input_dict):
        u = input_dict[self.invar]
        assert u.ndim - 2 == self.dim, (
            f"Expected a {self.dim + 2} dimensional tensor, but got {u.ndim} dimensional tensor"
        )
        if self.dim == 1:
            outs = self._run_1d(u)
        else:
            outs = self._run_nd(u)

        axis_list = ["x", "y", "z"]
        result = {}
        if self.order == 1:
            for a in range(self.dim):
                result[f"{self.invar}__{axis_list[a]}"] = outs[a]
        else:
            for a in range(self.dim):
                result[f"{self.invar}__{axis_list[a]}__{axis_list[a]}"] = outs[a]
            if self.return_mixed_derivs:
                result[f"{self.invar}__x__y"] = outs[self.dim + 0]
                result[f"{self.invar}__y__x"] = outs[self.dim + 0]
                if self.dim == 3:
                    result[f"{self.invar}__x__z"] = outs[self.dim + 1]
                    result[f"{self.invar}__z__x"] = outs[self.dim + 1]
                    result[f"{self.invar}__y__z"] = outs[self.dim + 2]
                    result[f"{self.invar}__z__y"] = outs[self.dim + 2]
        return result

    # ------------------------------------------------------------------ #
    def _run_nd(self, u):
        N, C = int(u.shape[0]), int(u.shape[1])
        spatial = tuple(int(s) for s in u.shape[2:])
        S0 = spatial[0]
        tail = spatial[1:]
        n_out = self.dim + self._num_mixed()
        in_itemsize = np.dtype(u.dtype).itemsize
        stage_itemsize = 2 if u.dtype == jnp.bfloat16 else 4
        plane = int(np.prod(tail))

        if self.dim == 3:
            # Stream the leading spatial axis through the grid.  The 1-row
            # replicate halo is provided by two extra clamped-index blocked
            # windows into the same array (no HBM padding, fully pipelined).
            T = self._pick_tile_rows(S0, plane, in_itemsize, stage_itemsize, n_out)
            has_halo = True
            grid = (N, C, S0 // T)
            main_spec = pl.BlockSpec((None, None, T) + tail,
                                     lambda n, c, t: (n, c, t, 0, 0))
            lo_spec = pl.BlockSpec(
                (None, None, 1) + tail,
                lambda n, c, t: (n, c, jnp.maximum(t * T - 1, 0), 0, 0))
            hi_spec = pl.BlockSpec(
                (None, None, 1) + tail,
                lambda n, c, t: (n, c, jnp.minimum(t * T + T, S0 - 1), 0, 0))
            in_specs = [lo_spec, main_spec, hi_spec]
            operands = (u, u, u)
            out_spec = pl.BlockSpec((None, None, T) + tail,
                                    lambda n, c, t: (n, c, t, 0, 0))
            semantics = ("parallel", "parallel", "parallel")
            work = self._work_bytes(T, T, plane, in_itemsize, stage_itemsize, n_out)
        else:  # dim == 2: one spatial block per (n, c); edge rows replicated in-kernel.
            # TODO(synk): halo-tile the 2D leading (sublane) axis as well; the
            # VMEM-limit policy below keeps moderate 2D volumes compiling.
            has_halo = False
            grid = (N, C)
            main_spec = pl.BlockSpec((None, None) + spatial,
                                     lambda n, c: (n, c, 0, 0))
            in_specs = [main_spec]
            operands = (u,)
            out_spec = pl.BlockSpec((None, None) + spatial,
                                    lambda n, c: (n, c, 0, 0))
            semantics = ("parallel", "parallel")
            work = self._work_bytes(S0, S0, plane, in_itemsize, stage_itemsize, n_out)

        vmem_limit = None
        if work > _VMEM_SOFT_BUDGET:
            vmem_limit = int(min(max(work * 3 // 2, 32 * _MIB), _VMEM_LIMIT_CAP))

        kernel = functools.partial(
            _fd_nd_kernel,
            dim=self.dim,
            dx=tuple(self.dx),
            order=self.order,
            return_mixed_derivs=self.return_mixed_derivs,
            has_halo=has_halo,
        )

        # Memory-bound cost hint: one input read + n_out output writes.
        cost = pl.CostEstimate(
            flops=int(6 * n_out * u.size),
            transcendentals=0,
            bytes_accessed=int((1 + n_out) * u.size * in_itemsize),
        )

        outs = pl.pallas_call(
            kernel,
            grid=grid,
            out_shape=tuple(jax.ShapeDtypeStruct(u.shape, u.dtype) for _ in range(n_out)),
            in_specs=in_specs,
            out_specs=tuple(out_spec for _ in range(n_out)),
            compiler_params=pltpu.CompilerParams(
                dimension_semantics=semantics,
                vmem_limit_bytes=vmem_limit,
            ),
            cost_estimate=cost,
        )(*operands)
        return list(outs)

    # ------------------------------------------------------------------ #
    def _run_1d(self, u):
        N, C, S = (int(s) for s in u.shape)
        NC = N * C
        x = u.reshape(NC, S)
        in_itemsize = np.dtype(u.dtype).itemsize
        # Pack multiple independent rows per block (full-sublane vregs, fewer
        # grid steps) instead of one (1, S) tile per (n, c).
        if NC % 8 == 0:
            R = 8
            for r in range(8, min(NC, 4096) + 1, 8):
                if NC % r == 0 and r * S * in_itemsize <= 2 * _MIB:
                    R = r
        else:
            R = NC  # block equals the full first dim (always layout-legal)
        spec = pl.BlockSpec((R, S), lambda i: (i, 0))
        kernel = functools.partial(_fd_1d_kernel, dx=self.dx[0], order=self.order)
        cost = pl.CostEstimate(
            flops=int(6 * u.size),
            transcendentals=0,
            bytes_accessed=int(2 * u.size * in_itemsize),
        )
        out = pl.pallas_call(
            kernel,
            grid=(NC // R,),
            out_shape=jax.ShapeDtypeStruct((NC, S), u.dtype),
            in_specs=[spec],
            out_specs=spec,
            compiler_params=pltpu.CompilerParams(dimension_semantics=("parallel",)),
            cost_estimate=cost,
        )(x)
        return [out.reshape(N, C, S)]


# --------------------------------------------------------------------------- #
# Plain-JAX reference (pad-based, same math) for a sanity check.
# --------------------------------------------------------------------------- #
def _reference(u, dim, dx, order, return_mixed_derivs):
    u_pad = jnp.pad(u, [(0, 0), (0, 0)] + [(1, 1)] * dim, mode="edge").astype(jnp.float32)

    def window(offsets):
        idx = [slice(None), slice(None)]
        for a in range(dim):
            n = u.shape[a + 2]
            idx.append(slice(offsets[a], offsets[a] + n))
        return u_pad[tuple(idx)]

    outs = []
    for a in range(dim):
        off_p = [1] * dim
        off_m = [1] * dim
        off_p[a] = 2
        off_m[a] = 0
        if order == 1:
            outs.append((window(off_p) - window(off_m)) * (0.5 / dx[a]))
        else:
            outs.append(
                (window(off_p) - 2.0 * window([1] * dim) + window(off_m))
                * (1.0 / (dx[a] * dx[a]))
            )
    if return_mixed_derivs:
        pairs = [(0, 1)] if dim == 2 else [(0, 1), (0, 2), (1, 2)]
        for (a, b) in pairs:
            def shifted(da, db, _a=a, _b=b):
                off = [1] * dim
                off[_a] = 1 + da
                off[_b] = 1 + db
                return window(off)

            outs.append(
                (shifted(1, 1) - shifted(1, -1) - shifted(-1, 1) + shifted(-1, -1))
                * (1.0 / (4.0 * dx[a] * dx[b]))
            )
    return [o.astype(u.dtype) for o in outs]


if __name__ == "__main__":
    key = jax.random.PRNGKey(0)
    k1, k2, k3, k4, k5 = jax.random.split(key, 5)

    # ---- 3D, first-order (module defaults), auto tile selection ----
    u3 = jax.random.normal(k1, (2, 1, 8, 8, 8), dtype=jnp.float32)
    mod3 = GradientsFiniteDifference("u", dx=0.1, dim=3, order=1)
    res3 = mod3({"u": u3})
    jax.block_until_ready(res3)
    ref3 = _reference(u3, 3, [0.1, 0.1, 0.1], 1, False)
    for got, want in zip([res3["u__x"], res3["u__y"], res3["u__z"]], ref3):
        np.testing.assert_allclose(np.asarray(got), np.asarray(want), rtol=1e-5, atol=1e-4)

    # ---- 3D, second-order + mixed, forced leading-axis tiling (interior halos) ----
    u3b = jax.random.normal(k2, (2, 1, 16, 8, 8), dtype=jnp.float32)
    mod3b = GradientsFiniteDifference("u", dx=[0.1, 0.2, 0.3], dim=3, order=2,
                                      return_mixed_derivs=True, spatial_tile_rows=4)
    res3b = mod3b({"u": u3b})
    jax.block_until_ready(res3b)
    ref3b = _reference(u3b, 3, [0.1, 0.2, 0.3], 2, True)
    names = ["u__x__x", "u__y__y", "u__z__z", "u__x__y", "u__x__z", "u__y__z"]
    for name, want in zip(names, ref3b):
        np.testing.assert_allclose(np.asarray(res3b[name]), np.asarray(want),
                                   rtol=1e-5, atol=1e-4)
    np.testing.assert_allclose(np.asarray(res3b["u__x__y"]),
                               np.asarray(res3b["u__y__x"]), atol=0, rtol=0)

    # ---- 3D, lane-aligned minor dim (pltpu.roll fast path) + tiling ----
    u3c = jax.random.normal(k3, (1, 1, 4, 8, 128), dtype=jnp.float32)
    mod3c = GradientsFiniteDifference("u", dx=[0.1, 0.2, 0.3], dim=3, order=2,
                                      return_mixed_derivs=True, spatial_tile_rows=2)
    res3c = mod3c({"u": u3c})
    jax.block_until_ready(res3c)
    ref3c = _reference(u3c, 3, [0.1, 0.2, 0.3], 2, True)
    for name, want in zip(names, ref3c):
        np.testing.assert_allclose(np.asarray(res3c[name]), np.asarray(want),
                                   rtol=1e-5, atol=1e-4)

    # ---- 2D, second-order + mixed (untiled path, in-kernel edge rows) ----
    u2 = jax.random.normal(k4, (2, 1, 16, 16), dtype=jnp.float32)
    mod2 = GradientsFiniteDifference("u", dx=[0.1, 0.2], dim=2, order=2,
                                     return_mixed_derivs=True)
    res2 = mod2({"u": u2})
    jax.block_until_ready(res2)
    ref2 = _reference(u2, 2, [0.1, 0.2], 2, True)
    for got, want in zip([res2["u__x__x"], res2["u__y__y"], res2["u__x__y"]], ref2):
        np.testing.assert_allclose(np.asarray(got), np.asarray(want), rtol=1e-5, atol=1e-4)

    # ---- 1D, first-order (rows packed into sublanes) ----
    u1 = jax.random.normal(k5, (2, 4, 64), dtype=jnp.float32)
    mod1 = GradientsFiniteDifference("u", dx=0.05, dim=1, order=1)
    res1 = mod1({"u": u1})
    jax.block_until_ready(res1)
    ref1 = _reference(u1, 1, [0.05], 1, False)
    np.testing.assert_allclose(np.asarray(res1["u__x"]), np.asarray(ref1[0]),
                               rtol=1e-5, atol=1e-4)

    print("KERNEL_OK")
</pallas_src>

<mosaic_0001>
module attributes {stable_mosaic.version = 11 : i64} {
  func.func @_fd_nd_kernel(%arg0: i32, %arg1: i32, %arg2: i32, %arg3: memref<1x1x1x8x8xf32, #tpu.memory_space<vmem>>, %arg4: memref<1x1x8x8x8xf32, #tpu.memory_space<vmem>>, %arg5: memref<1x1x1x8x8xf32, #tpu.memory_space<vmem>>, %arg6: memref<1x1x8x8x8xf32, #tpu.memory_space<vmem>>, %arg7: memref<1x1x8x8x8xf32, #tpu.memory_space<vmem>>, %arg8: memref<1x1x8x8x8xf32, #tpu.memory_space<vmem>>) attributes {dimension_semantics = [#tpu.dimension_semantics<parallel>, #tpu.dimension_semantics<parallel>, #tpu.dimension_semantics<parallel>], iteration_bounds = array<i64: 2, 1, 1>, scalar_prefetch = 0 : i64, scratch_operands = 0 : i64, tpu.core_type = #tpu.core_type<tc>, window_params = [{transform_indices = @transform_0, window_bounds = array<i64: 1, 1, 1, 8, 8>}, {transform_indices = @transform_1, window_bounds = array<i64: 1, 1, 8, 8, 8>}, {transform_indices = @transform_2, window_bounds = array<i64: 1, 1, 1, 8, 8>}, {transform_indices = @transform_3, window_bounds = array<i64: 1, 1, 8, 8, 8>}, {transform_indices = @transform_4, window_bounds = array<i64: 1, 1, 8, 8, 8>}, {transform_indices = @transform_5, window_bounds = array<i64: 1, 1, 8, 8, 8>}]} {
    %c0 = arith.constant 0 : index
    %c0_0 = arith.constant 0 : index
    %c0_1 = arith.constant 0 : index
    %c0_2 = arith.constant 0 : index
    %c0_3 = arith.constant 0 : index
    %0 = vector.load %arg4[%c0, %c0_0, %c0_1, %c0_2, %c0_3] : memref<1x1x8x8x8xf32, #tpu.memory_space<vmem>>, vector<1x1x8x8x8xf32>
    %1 = vector.shape_cast %0 : vector<1x1x8x8x8xf32> to vector<8x8x8xf32>
    %c0_4 = arith.constant 0 : index
    %c0_5 = arith.constant 0 : index
    %c0_6 = arith.constant 0 : index
    %c0_7 = arith.constant 0 : index
    %c0_8 = arith.constant 0 : index
    %2 = vector.load %arg3[%c0_4, %c0_5, %c0_6, %c0_7, %c0_8] : memref<1x1x1x8x8xf32, #tpu.memory_space<vmem>>, vector<1x1x1x8x8xf32>
    %3 = vector.shape_cast %2 : vector<1x1x1x8x8xf32> to vector<1x8x8xf32>
    %c0_9 = arith.constant 0 : index
    %c0_10 = arith.constant 0 : index
    %c0_11 = arith.constant 0 : index
    %c0_12 = arith.constant 0 : index
    %c0_13 = arith.constant 0 : index
    %4 = vector.load %arg5[%c0_9, %c0_10, %c0_11, %c0_12, %c0_13] : memref<1x1x1x8x8xf32, #tpu.memory_space<vmem>>, vector<1x1x1x8x8xf32>
    %5 = vector.shape_cast %4 : vector<1x1x1x8x8xf32> to vector<1x8x8xf32>
    %6 = tpu.concatenate %3, %1, %5 in 0 : vector<1x8x8xf32>, vector<8x8x8xf32>, vector<1x8x8xf32> -> vector<10x8x8xf32>
    %7 = vector.extract_strided_slice %6 {offsets = [2, 0, 0], sizes = [8, 8, 8], strides = [1, 1, 1]} : vector<10x8x8xf32> to vector<8x8x8xf32>
    %8 = vector.extract_strided_slice %6 {offsets = [0, 0, 0], sizes = [8, 8, 8], strides = [1, 1, 1]} : vector<10x8x8xf32> to vector<8x8x8xf32>
    %9 = arith.subf %7, %8 : vector<8x8x8xf32>
    %cst = arith.constant 5.000000e+00 : f32
    %10 = vector.broadcast %cst : f32 to vector<8x8x8xf32>
    %11 = arith.mulf %9, %10 : vector<8x8x8xf32>
    %c0_14 = arith.constant 0 : index
    %c0_15 = arith.constant 0 : index
    %c0_16 = arith.constant 0 : index
    %c0_17 = arith.constant 0 : index
    %c0_18 = arith.constant 0 : index
    %12 = vector.load %arg6[%c0_14, %c0_15, %c0_16, %c0_17, %c0_18] : memref<1x1x8x8x8xf32, #tpu.memory_space<vmem>>, vector<1x1x8x8x8xf32>
    %13 = vector.shape_cast %12 : vector<1x1x8x8x8xf32> to vector<8x8x8xf32>
    %14 = vector.shape_cast %11 : vector<8x8x8xf32> to vector<1x1x8x8x8xf32>
    tpu.vector_store %arg6[%c0_14, %c0_15, %c0_16, %c0_17, %c0_18], %14 {strides = array<i32>} : memref<1x1x8x8x8xf32, #tpu.memory_space<vmem>>, vector<1x1x8x8x8xf32>,
    %15 = vector.extract_strided_slice %1 {offsets = [0, 1, 0], sizes = [8, 7, 8], strides = [1, 1, 1]} : vector<8x8x8xf32> to vector<8x7x8xf32>
    %16 = vector.extract_strided_slice %1 {offsets = [0, 7, 0], sizes = [8, 1, 8], strides = [1, 1, 1]} : vector<8x8x8xf32> to vector<8x1x8xf32>
    %17 = tpu.concatenate %15, %16 in 1 : vector<8x7x8xf32>, vector<8x1x8xf32> -> vector<8x8x8xf32>
    %18 = vector.extract_strided_slice %1 {offsets = [0, 0, 0], sizes = [8, 1, 8], strides = [1, 1, 1]} : vector<8x8x8xf32> to vector<8x1x8xf32>
    %19 = vector.extract_strided_slice %1 {offsets = [0, 0, 0], sizes = [8, 7, 8], strides = [1, 1, 1]} : vector<8x8x8xf32> to vector<8x7x8xf32>
    %20 = tpu.concatenate %18, %19 in 1 : vector<8x1x8xf32>, vector<8x7x8xf32> -> vector<8x8x8xf32>
    %21 = arith.subf %17, %20 : vector<8x8x8xf32>
    %cst_19 = arith.constant 5.000000e+00 : f32
    %22 = vector.broadcast %cst_19 : f32 to vector<8x8x8xf32>
    %23 = arith.mulf %21, %22 : vector<8x8x8xf32>
    %c0_20 = arith.constant 0 : index
    %c0_21 = arith.constant 0 : index
    %c0_22 = arith.constant 0 : index
    %c0_23 = arith.constant 0 : index
    %c0_24 = arith.constant 0 : index
    %24 = vector.load %arg7[%c0_20, %c0_21, %c0_22, %c0_23, %c0_24] : memref<1x1x8x8x8xf32, #tpu.memory_space<vmem>>, vector<1x1x8x8x8xf32>
    %25 = vector.shape_cast %24 : vector<1x1x8x8x8xf32> to vector<8x8x8xf32>
    %26 = vector.shape_cast %23 : vector<8x8x8xf32> to vector<1x1x8x8x8xf32>
    tpu.vector_store %arg7[%c0_20, %c0_21, %c0_22, %c0_23, %c0_24], %26 {strides = array<i32>} : memref<1x1x8x8x8xf32, #tpu.memory_space<vmem>>, vector<1x1x8x8x8xf32>,
    %27 = vector.extract_strided_slice %1 {offsets = [0, 0, 1], sizes = [8, 8, 7], strides = [1, 1, 1]} : vector<8x8x8xf32> to vector<8x8x7xf32>
    %28 = vector.extract_strided_slice %1 {offsets = [0, 0, 7], sizes = [8, 8, 1], strides = [1, 1, 1]} : vector<8x8x8xf32> to vector<8x8x1xf32>
    %29 = tpu.concatenate %27, %28 in 2 : vector<8x8x7xf32>, vector<8x8x1xf32> -> vector<8x8x8xf32>
    %30 = vector.extract_strided_slice %1 {offsets = [0, 0, 0], sizes = [8, 8, 1], strides = [1, 1, 1]} : vector<8x8x8xf32> to vector<8x8x1xf32>
    %31 = vector.extract_strided_slice %1 {offsets = [0, 0, 0], sizes = [8, 8, 7], strides = [1, 1, 1]} : vector<8x8x8xf32> to vector<8x8x7xf32>
    %32 = tpu.concatenate %30, %31 in 2 : vector<8x8x1xf32>, vector<8x8x7xf32> -> vector<8x8x8xf32>
    %33 = arith.subf %29, %32 : vector<8x8x8xf32>
    %cst_25 = arith.constant 5.000000e+00 : f32
    %34 = vector.broadcast %cst_25 : f32 to vector<8x8x8xf32>
    %35 = arith.mulf %33, %34 : vector<8x8x8xf32>
    %c0_26 = arith.constant 0 : index
    %c0_27 = arith.constant 0 : index
    %c0_28 = arith.constant 0 : index
    %c0_29 = arith.constant 0 : index
    %c0_30 = arith.constant 0 : index
    %36 = vector.load %arg8[%c0_26, %c0_27, %c0_28, %c0_29, %c0_30] : memref<1x1x8x8x8xf32, #tpu.memory_space<vmem>>, vector<1x1x8x8x8xf32>
    %37 = vector.shape_cast %36 : vector<1x1x8x8x8xf32> to vector<8x8x8xf32>
    %38 = vector.shape_cast %35 : vector<8x8x8xf32> to vector<1x1x8x8x8xf32>
    tpu.vector_store %arg8[%c0_26, %c0_27, %c0_28, %c0_29, %c0_30], %38 {strides = array<i32>} : memref<1x1x8x8x8xf32, #tpu.memory_space<vmem>>, vector<1x1x8x8x8xf32>,
    return
  }
  func.func @transform_0(%arg0: i32, %arg1: i32, %arg2: i32) -> (i32, i32, i32, i32, i32) {
    %c8_i32 = arith.constant 8 : i32
    %0 = arith.muli %arg2, %c8_i32 : i32
    %c1_i32 = arith.constant 1 : i32
    %1 = arith.subi %0, %c1_i32 : i32
    %c0_i32 = arith.constant 0 : i32
    %2 = arith.maxsi %1, %c0_i32 : i32
    %c0_i32_0 = arith.constant 0 : i32
    %c0_i32_1 = arith.constant 0 : i32
    %c0_i32_2 = arith.constant 0 : i32
    return %arg0, %arg1, %2, %c0_i32_0, %c0_i32_1 : i32, i32, i32, i32, i32
  }
  func.func @transform_1(%arg0: i32, %arg1: i32, %arg2: i32) -> (i32, i32, i32, i32, i32) {
    %c0_i32 = arith.constant 0 : i32
    %c0_i32_0 = arith.constant 0 : i32
    %c0_i32_1 = arith.constant 0 : i32
    return %arg0, %arg1, %arg2, %c0_i32, %c0_i32_0 : i32, i32, i32, i32, i32
  }
  func.func @transform_2(%arg0: i32, %arg1: i32, %arg2: i32) -> (i32, i32, i32, i32, i32) {
    %c8_i32 = arith.constant 8 : i32
    %0 = arith.muli %arg2, %c8_i32 : i32
    %c8_i32_0 = arith.constant 8 : i32
    %1 = arith.addi %0, %c8_i32_0 : i32
    %c7_i32 = arith.constant 7 : i32
    %2 = arith.minsi %1, %c7_i32 : i32
    %c0_i32 = arith.constant 0 : i32
    %c0_i32_1 = arith.constant 0 : i32
    %c0_i32_2 = arith.constant 0 : i32
    return %arg0, %arg1, %2, %c0_i32, %c0_i32_1 : i32, i32, i32, i32, i32
  }
  func.func @transform_3(%arg0: i32, %arg1: i32, %arg2: i32) -> (i32, i32, i32, i32, i32) {
    %c0_i32 = arith.constant 0 : i32
    %c0_i32_0 = arith.constant 0 : i32
    %c0_i32_1 = arith.constant 0 : i32
    return %arg0, %arg1, %arg2, %c0_i32, %c0_i32_0 : i32, i32, i32, i32, i32
  }
  func.func @transform_4(%arg0: i32, %arg1: i32, %arg2: i32) -> (i32, i32, i32, i32, i32) {
    %c0_i32 = arith.constant 0 : i32
    %c0_i32_0 = arith.constant 0 : i32
    %c0_i32_1 = arith.constant 0 : i32
    return %arg0, %arg1, %arg2, %c0_i32, %c0_i32_0 : i32, i32, i32, i32, i32
  }
  func.func @transform_5(%arg0: i32, %arg1: i32, %arg2: i32) -> (i32, i32, i32, i32, i32) {
    %c0_i32 = arith.constant 0 : i32
    %c0_i32_0 = arith.constant 0 : i32
    %c0_i32_1 = arith.constant 0 : i32
    return %arg0, %arg1, %arg2, %c0_i32, %c0_i32_0 : i32, i32, i32, i32, i32
  }
}

</mosaic_0001>

<bundles_post_ra>
// kernel: tpu_custom_call.1
= control target key start
LH: loop header
LB: loop body
LE: loop exit
PB: predicated region body
PF: predicated region fallthrough
CT: control target
= control target key end

     0   :  { %s1724_s0 = inlined_call_operand.hbm [shape: f32[2,1,8,8,8], index: 0, kind: input, shape index: {}]   ;;  %s1725_s1 = inlined_call_operand.hbm [shape: f32[2,1,8,8,8], index: 1, kind: input, shape index: {}]   ;;  %s1726_s2 = inlined_call_operand.hbm [shape: f32[2,1,8,8,8], index: 2, kind: input, shape index: {}]   ;;  %s1727_s3 = inlined_call_operand.hbm [shape: f32[2,1,8,8,8], index: 3, kind: output, shape index: {0}]   ;;  %s1728_s4 = inlined_call_operand.hbm [shape: f32[2,1,8,8,8], index: 4, kind: output, shape index: {1}]   ;;  %s1729_s5 = inlined_call_operand.hbm [shape: f32[2,1,8,8,8], index: 5, kind: output, shape index: {2}]  }
   0x1   :  { %1737 = sst [smem:[#allocation22_spill]] %s1725_s1 }
   0x2   :  { %11 = vsyncpa [#allocation3], 0 }
   0x3   :  { %13 = vsyncpa [#allocation3 + $0x1], 0 }
   0x4   :  { %14 = vsyncpa [#allocation6], 0 }
   0x5   :  { %16 = vsyncpa [#allocation6 + $0x1], 0 }
   0x6   :  { %17 = vsyncpa [#allocation4], 0 }
   0x7   :  { %19 = vsyncpa [#allocation4 + $0x1], 0 }
   0x8   :  { %20 = vsyncpa [#allocation10], 0 }
   0x9   :  { %22 = vsyncpa [#allocation10 + $0x1], 0  ;;  %s1327_s18 = smov 0   ;;  %s1329_s19 = smov 0  }
   0xa   :  { %s1331_s20 = smov 0   ;;  %s1333_s21 = smov 0  }
   0xb   :  { %s1335_s22 = smov 0   ;;  %s1337_s23 = smov 0  }
   0xc LB: > { %1738 = sst [smem:[#allocation16_spill]] %s1277_s20  ;;  %s1358_s24 = sadd.s32 4294967295, %s1289_s23   ;;  %s1289_s23 = sphi %s1337_s23, %s28_s23   ;;  %s1285_s22 = sphi %s1335_s22, %s1757_s22   ;;  %s1281_s21 = sphi %s1333_s21, %s1756_s21   ;;  %s1277_s20 = sphi %s1331_s20, %s1755_s20   ;;  %s1273_s19 = sphi %s1329_s19, %s1759_s19   ;;  %s1269_s18 = sphi %s1327_s18, %s1758_s18  }
   0xd   : > { %1739 = sst [smem:[#allocation17_spill]] %s1285_s22  ;;  %s1730_s25 = sadd.s32 4294967294, %s1289_s23  }
   0xe   : > { %1740 = sst [smem:[#allocation18_spill]] %s1289_s23  ;;  %s47_s26 = sadd.s32 1, %s1285_s22 }
   0xf   : > { %s66_s27 = sadd.s32 1, %s1277_s20  ;;  %p49_p0 = scmp.ge.s32.totalorder %s47_s26, 2 }
  0x10   : > { %p73_p1 = scmp.ne.s32.totalorder %s1277_s20, %s1273_s19  ;;  %p74_p2 = scmp.eq.s32.totalorder %s1289_s23, 0 }
  0x11   : > { %p79_p3 = scmp.ne.s32.totalorder %s1273_s19, %s1269_s18  ;;  %s1761_s26 = smov (%p49_p0, %s47_s26), 0 }
  0x12   : > { %1741 = sst [smem:[#allocation19_spill]] %s1761_s26  ;;  %p1370_p4 = por %p74_p2, %p73_p1 }
  0x13   : > { %p80_p5 = scmp.eq.s32.totalorder %s1358_s24, 0  ;;  %s59_s29 = ssub.s32 %s1285_s22, %s1761_s26 }
  0x14   : > { %p175_p6 = scmp.eq.s32.totalorder %s1358_s24, 1  ;;  %p64_p7 = scmp.eq.s32.totalorder %s59_s29, 0 }
  0x15   : > { %p1378_p8 = por %p80_p5, %p79_p3  ;;  %p181_p10 = scmp.eq.s32.totalorder %s1730_s25, 1 }
  0x16   : > { %p1382_p9 = por %p175_p6, %p73_p1  ;;  %p929_p12 = scmp.ge.s32.totalorder %s1289_s23, 2 }
  0x17   : > { %s1389_s7 = scalar_select %p64_p7, %s1277_s20, %s66_s27  }
  0x18   : > { %p1391_p11 = por %p181_p10, %p79_p3  ;;  %p997_p13 = scmp.lt.s32.totalorder %s1289_s23, 2 }
  0x19   : > { %1745 = sst [smem:[#allocation20_spill]] %s1389_s7  ;;  %s261_s9 = sand.u32 1, %s1277_s20  }
  0x1a   : > { %s1746_s8 = scalar_select %p1391_p11, 1, 0 }
  0x1b   : > { %s1399_s10 = sshll.u32 %s1285_s22, 6  ;;  %s288_s11 = sand.u32 1, %s1289_s23  }
  0x1c   : > { %1747 = sst [smem:[#allocation21_spill]] %s1746_s8  ;;  %p1404_p0 = pnand %p997_p13, %p1370_p4 }
  0x1d   : > { %s933_s13 = sshll.u32 %s261_s9, 6  ;;  %s1749_s1 = sld [smem:[#allocation22_spill]] }
  0x1e   : > { %s292_s27 = scalar_lea.vmem [#allocation5], %s933_s13  ;;  %s289_s25 = scalar_lea.sflag [#allocation6], %s288_s11 }
  0x1f   : > { %s304_s29 = sshll.u32 %s292_s27, 4  ;;  %s1291_s28 = smov 128   ;;  %s305_s29 = int_to_ptr.vmem [resolvable:$true] %s304_s29 }
  0x20   : > { %s1292_s26 = smov 8   ;;  %p939_p1 = scmp.ge.s32.totalorder %s1289_s23, 1 }
  0x21   : > { %p339_p2 = scmp.lt.s32.totalorder %s1289_s23, 3  ;;  %s930_s14 = sshll.u32 %s261_s9, 3 }
  0x22   : > { %s277_s13 = scalar_lea.hbm %s1724_s0, %s1399_s10  ;;  %s265_s11 = scalar_lea.vmem [#allocation2], %s930_s14 }
  0x23   : > { %s301_s16 = scalar_lea.hbm %s1749_s1, %s1399_s10  ;;  %p1416_p3 = pnand %p939_p1, %p339_p2 }
  0x24   : > { %s302_s17 = sshll.u32 %s301_s16, 4  ;;  %s279_s27 = sshll.u32 %s277_s13, 4  ;;  %s303_s17 = int_to_ptr.hbm [resolvable:$true] %s302_s17  ;;  %s280_s27 = int_to_ptr.hbm [resolvable:$true] %s279_s27 }
  0x25   : > { %983 = dma.hbm_to_vmem [thread:$0]  (!%p1404_p0), %s303_s17, 1024, %s305_s29, %s289_s25, %s1291_s28, %s1291_s28, %s1292_s26  }
  0x26   : > { %s281_s1 = sshll.u32 %s265_s11, 4  ;;  %s262_s7 = scalar_lea.sflag [#allocation3], %s261_s9  ;;  %s282_s1 = int_to_ptr.vmem [resolvable:$true] %s281_s1 }
  0x27   : > { %980 = dma.hbm_to_vmem [thread:$0]  (!%p1404_p0), %s280_s27, 128, %s282_s1, %s262_s7  }
  0x28   : > { %s960_s26 = sadd.s32 56, %s1399_s10  ;;  %s318_s17 = scalar_lea.vmem [#allocation7], %s930_s14 }
  0x29   : > { %s334_s29 = sshll.u32 %s318_s17, 4  ;;  %s330_s23 = scalar_lea.hbm %s1726_s2, %s960_s26  ;;  %s335_s29 = int_to_ptr.vmem [resolvable:$true] %s334_s29 }
  0x2a   : > { %s332_s8 = sshll.u32 %s330_s23, 4  ;;  %343 = sbr.rel (%p1416_p3) target bundleno = 215 (0xd7), region = 32  ;;  %s333_s8 = int_to_ptr.hbm [resolvable:$true] %s332_s8 }
  0x2b   : > { %986 = dma.hbm_to_vmem [thread:$0]  (!%p1404_p0), %s333_s8, 128, %s335_s29, %s289_s25  }
  0x2c   : > { %s1435_s9 = sand.u32 (!%p1416_p3), 1, %s1273_s19  }
  0x2d   : > { %s940_s1 = sshll.u32 (!%p1416_p3), %s1435_s9, 3  ;;  %s346_s7 = scalar_lea.sflag (!%p1416_p3), [#allocation3], %s1435_s9 }
  0x2e   : > { %s1441_s20 = scalar_lea.vmem (!%p1416_p3), [#allocation2], %s940_s1 }
  0x2f   : > { %1252 = dma.done.wait (%p1378_p8), %s346_s7, 128  }
  0x30   : > { %1254 = vsyncadd (%p1378_p8), %s346_s7, 4294967168  ;;  %s355_s22 = sand.u32 1, %s1358_s24   ;;  %s1449_s23 = sshll.u32 %s1435_s9, 6 }
  0x31   : > { %s356_s25 = scalar_lea.sflag [#allocation6], %s355_s22  ;;  %s359_s8 = scalar_lea.vmem [#allocation5], %s1449_s23 }
  0x32   : > { %1256 = dma.done.wait (%p1378_p8), %s356_s25, 1152  }
  0x33   : > { %1258 = vsyncadd (%p1378_p8), %s356_s25, 4294966144  ;;  %v1458_v0 = vld [vmem:[%s359_s8 + $0x10] sm:$0xff]  ;;  %v1460_v1 = vld [vmem:[%s359_s8] sm:$0xff]  ;;  %s1293_s10 = smov 127   ;;  %s1294_s30 = smov 1   ;;  %vm488_vm0 = vcmask 1046528  }
  0x34   : > { %v1462_v2 = vld [vmem:[%s359_s8 + $0x20] sm:$0xff]  ;;  %550 = vrot.lane.b32.xlu1 %v1458_v0, %s1293_s10  ;;  %546 = vrot.lane.b32.xlu0 %v1460_v1, %s1293_s10  ;;  %v1467_v3 = vld [vmem:[%s359_s8 + $0x18] sm:$0xff]  ;;  %v472_v8 = vrot.slane %v1460_v1, 1  ;;  %v497_v9 = vrot.slane %v1460_v1, 7  ;;  %vm513_vm1 = vcmask 1040384   ;;  %v474_v10 = vrot.slane %v1458_v0, 1 }
  0x35   : > { %554 = vrot.lane.b32.xlu2 %v1462_v2, %s1293_s10  ;;  %v1469_v4 = vld [vmem:[%s359_s8 + $0x8] sm:$0xff]  ;;  %v1476_v6 = vld [vmem:[%s359_s8 + $0x38] sm:$0xff]  ;;  %v1478_v7 = vld [vmem:[%s359_s8 + $0x30] sm:$0xff]  ;;  %v499_v13 = vrot.slane %v1458_v0, 7  ;;  %v475_v16 = vrot.slane %v1467_v3, 1  ;;  %v500_v17 = vrot.slane %v1467_v3, 7  ;;  %v440_v56 = vsub.f32 %v1458_v0, %v1460_v1 }
  0x36   : > { %v1471_v5 = vld [vmem:[%s359_s8 + $0x28] sm:$0xff]  ;;  %v473_v11 = vrot.slane %v1469_v4, 1  ;;  %v498_v12 = vrot.slane %v1469_v4, 7  ;;  %v489_v14 = vsel %vm488_vm0, %v472_v8, %v1460_v1  ;;  %v514_v15 = vsel %vm513_vm1, %v1460_v1, %v497_v9  ;;  %s1539_s12 = sshll.u32 %s1281_s21, 6  ;;  %v437_v49 = vld [vmem:[%s1441_s20] sm:$0xff]  ;;  %s409_s13 = scalar_lea.vmem [#allocation9], %s1449_s23 }
  0x37   : > { %v491_v18 = vsel %vm488_vm0, %v474_v10, %v1458_v0  ;;  %v476_v19 = vrot.slane %v1462_v2, 1  ;;  %v501_v20 = vrot.slane %v1462_v2, 7  ;;  %v477_v23 = vrot.slane %v1471_v5, 1  ;;  %s683_s16 = scalar_lea.hbm %s1728_s4, %s1539_s12  ;;  %s684_s21 = sshll.u32 %s409_s13, 4  ;;  %s1566_s21 = int_to_ptr.vmem [resolvable:$true] %s684_s21 }
  0x38   : > { %v490_v21 = vsel %vm488_vm0, %v473_v11, %v1469_v4  ;;  %v515_v22 = vsel %vm513_vm1, %v1469_v4, %v498_v12  ;;  %v502_v24 = vrot.slane %v1471_v5, 7  ;;  %v516_v25 = vsel %vm513_vm1, %v1458_v0, %v499_v13  ;;  %s1553_s27 = sshll.u32 %s683_s16, 4  ;;  %s369_s11 = scalar_lea.vmem [#allocation7], %s940_s1  ;;  %s687_s27 = int_to_ptr.hbm [resolvable:$true] %s1553_s27 }
  0x39   : > { %v522_v26 = vsub.f32 %v489_v14, %v514_v15  ;;  %v478_v27 = vrot.slane %v1478_v7, 1  ;;  %v503_v28 = vrot.slane %v1478_v7, 7  ;;  %v492_v29 = vsel %vm488_vm0, %v475_v16, %v1467_v3  ;;  %v438_v63 = vld [vmem:[%s369_s11] sm:$0xff]  ;;  %s662_s29 = scalar_lea.hbm %s1727_s3, %s1539_s12  ;;  %s1584_s28 = scalar_lea.sflag [#allocation10], %s355_s22 }
  0x3a   : > { %v517_v30 = vsel %vm513_vm1, %v1467_v3, %v500_v17  ;;  %v479_v31 = vrot.slane %v1476_v6, 1  ;;  %v504_v32 = vrot.slane %v1476_v6, 7  ;;  %v493_v33 = vsel %vm488_vm0, %v476_v19, %v1462_v2  ;;  %s1157_s1 = sshra.s32 %s687_s27, 4  ;;  %s1163_s8 = scalar_lea.hbm %s1728_s4, 128  ;;  %s1158_s1 = int_to_ptr.hbm [resolvable:$true] %s1157_s1 }
  0x3b   : > { %v518_v34 = vsel %vm513_vm1, %v1462_v2, %v501_v20  ;;  %v523_v35 = vsub.f32 %v490_v21, %v515_v22  ;;  %v524_v36 = vsub.f32 %v491_v18, %v516_v25  ;;  %v494_v37 = vsel %vm488_vm0, %v477_v23, %v1471_v5  ;;  %s1159_s7 = scalar_lea.hbm %s1158_s1, 64  ;;  %p1164_p7 = scmp.lt.s32.totalorder %s1158_s1, %s1728_s4 }
  0x3c   : > { %552 = vrot.lane.b32.xlu1 %v1467_v3, %s1293_s10  ;;  %548 = vrot.lane.b32.xlu0 %v1469_v4, %s1293_s10  ;;  %v519_v38 = vsel %vm513_vm1, %v1471_v5, %v502_v24  ;;  %v525_v39 = vsub.f32 %v492_v29, %v517_v30  ;;  %v495_v40 = vsel %vm488_vm0, %v478_v27, %v1478_v7  ;;  %v530_v42 = vmul.f32 5.0, %v522_v26  ;;  %p1160_p4 = scmp.ne.s32.totalorder %s1158_s1, %s1159_s7  ;;  %p1165_p8 = scmp.lt.s32.totalorder %s1163_s8, %s1159_s7 }
  0x3d   : > { %556 = vrot.lane.b32.xlu2 %v1471_v5, %s1293_s10  ;;  %v520_v41 = vsel %vm513_vm1, %v1478_v7, %v503_v28  ;;  %v526_v43 = vsub.f32 %v493_v33, %v518_v34  ;;  %v496_v44 = vsel %vm488_vm0, %v479_v31, %v1476_v6  ;;  %v521_v45 = vsel %vm513_vm1, %v1476_v6, %v504_v32 }
  0x3e   : > { %v531_v46 = vmul.f32 5.0, %v523_v35  ;;  %v527_v47 = vsub.f32 %v494_v37, %v519_v38  ;;  %v532_v48 = vmul.f32 5.0, %v524_v36  ;;  %v528_v50 = vsub.f32 %v495_v40, %v520_v41  ;;  %p1161_p5 = pnand %p1160_p4, %p1382_p9  ;;  %p1166_p10 = por %p1165_p8, %p1164_p7 }
  0x3f   : > { %v533_v51 = vmul.f32 5.0, %v525_v39  ;;  %v529_v52 = vsub.f32 %v496_v44, %v521_v45  ;;  %vm455_vm2 = vcmask 64512   ;;  %v534_v53 = vmul.f32 5.0, %v526_v43 }
  0x40   : > { %538 = vst.msk [vmem:[%s409_s13] sm:$0xff] %vm455_vm2, %v530_v42  ;;  %v439_v54 = vsub.f32 %v1469_v4, %v437_v49  ;;  %v535_v55 = vmul.f32 5.0, %v527_v47  ;;  %v536_v57 = vmul.f32 5.0, %v528_v50  ;;  %v441_v58 = vsub.f32 %v1467_v3, %v1469_v4  ;;  %p1162_p6 = pneg %p1161_p5 }
  0x41   : > { %539 = vst.msk [vmem:[%s409_s13 + $0x8] sm:$0xff] %vm455_vm2, %v531_v46  ;;  %v537_v59 = vmul.f32 5.0, %v529_v52  ;;  %v442_v60 = vsub.f32 %v1462_v2, %v1458_v0  ;;  %v443_v62 = vsub.f32 %v1471_v5, %v1467_v3  ;;  %v448_v8 = vmul.f32 5.0, %v440_v56 }
  0x42   : > { %540 = vst.msk [vmem:[%s409_s13 + $0x10] sm:$0xff] %vm455_vm2, %v532_v48  ;;  %v447_v61 = vmul.f32 5.0, %v439_v54  ;;  %v444_v9 = vsub.f32 %v1478_v7, %v1462_v2  ;;  %v449_v10 = vmul.f32 5.0, %v441_v58  ;;  %v445_v11 = vsub.f32 %v1476_v6, %v1471_v5  ;;  %p1167_p13 = pnand %p1166_p10, %p1162_p6 }
  0x43   : > { %541 = vst.msk [vmem:[%s409_s13 + $0x18] sm:$0xff] %vm455_vm2, %v533_v51  ;;  %v450_v13 = vmul.f32 5.0, %v442_v60  ;;  %v446_v14 = vsub.f32 %v438_v63, %v1478_v7 }
  0x44   : > { %560 = vrot.lane.b32.xlu1 %v1476_v6, %s1293_s10  ;;  %558 = vrot.lane.b32.xlu0 %v1478_v7, %s1293_s10  ;;  %542 = vst.msk [vmem:[%s409_s13 + $0x20] sm:$0xff] %vm455_vm2, %v534_v53 }
  0x45   : > { %579 = vrot.lane.b32.xlu2 %v1460_v1, %s1294_s30  ;;  %543 = vst.msk [vmem:[%s409_s13 + $0x28] sm:$0xff] %vm455_vm2, %v535_v55 }
  0x46   : > { %544 = vst.msk [vmem:[%s409_s13 + $0x30] sm:$0xff] %vm455_vm2, %v536_v57 }
  0x47   : > { %545 = vst.msk [vmem:[%s409_s13 + $0x38] sm:$0xff] %vm455_vm2, %v537_v59 }
  0x4c   : > { %583 = vrot.lane.b32.xlu1 %v1458_v0, %s1294_s30  ;;  %581 = vrot.lane.b32.xlu0 %v1469_v4, %s1294_s30 }
  0x4d   : > { %585 = vrot.lane.b32.xlu2 %v1467_v3, %s1294_s30 }
  0x54   : > { %589 = vrot.lane.b32.xlu1 %v1471_v5, %s1294_s30  ;;  %587 = vrot.lane.b32.xlu0 %v1462_v2, %s1294_s30 }
  0x55   : > { %591 = vrot.lane.b32.xlu2 %v1478_v7, %s1294_s30 }
  0x5c   : > { %593 = vrot.lane.b32.xlu0 %v1476_v6, %s1294_s30 }
  0x8f   : > { %v1574_v12 = vpop.permute.xlu2 %554 }
  0x90   : > { %1170 = shalt.err (!%p1167_p13)
}
  0x91   : > { %s1295_s24 = smov 128   ;;  %s1296_s22 = smov 8   ;;  %v451_v15 = vmul.f32 5.0, %v443_v62  ;;  %v452_v16 = vmul.f32 5.0, %v444_v9  ;;  %v453_v17 = vmul.f32 5.0, %v445_v11  ;;  %v454_v18 = vmul.f32 5.0, %v446_v14 }
  0x92   : > { %972 = dma.vmem_to_hbm [thread:$0]  (%p1382_p9), %s1566_s21, 1024, %s687_s27, %s1584_s28, %s1295_s24, %s1295_s24, %s1296_s22  }
  0x93   : > { %s402_s14 = scalar_lea.vmem [#allocation8], %s1449_s23  ;;  %s665_s16 = sshll.u32 %s662_s29, 4  ;;  %s666_s16 = int_to_ptr.hbm [resolvable:$true] %s665_s16 }
  0x94   : > { %456 = vst.msk [vmem:[%s402_s14] sm:$0xff] %vm455_vm2, %v447_v61  ;;  %s663_s15 = sshll.u32 %s402_s14, 4  ;;  %s637_s13 = scalar_lea.sflag [#allocation4], %s1435_s9  ;;  %s664_s15 = int_to_ptr.vmem [resolvable:$true] %s663_s15 }
  0x95   : > { %457 = vst.msk [vmem:[%s402_s14 + $0x8] sm:$0xff] %vm455_vm2, %v448_v8  ;;  %s1185_s21 = sshra.s32 %s666_s16, 4  ;;  %s1191_s17 = scalar_lea.hbm %s1727_s3, 128  ;;  %s1186_s21 = int_to_ptr.hbm [resolvable:$true] %s1185_s21 }
  0x96   : > { %458 = vst.msk [vmem:[%s402_s14 + $0x10] sm:$0xff] %vm455_vm2, %v449_v10  ;;  %s1187_s27 = scalar_lea.hbm %s1186_s21, 64  ;;  %p1192_p3 = scmp.lt.s32.totalorder %s1186_s21, %s1727_s3 }
  0x97   : > { %459 = vst.msk [vmem:[%s402_s14 + $0x18] sm:$0xff] %vm455_vm2, %v450_v13  ;;  %v557_v19 = vpop.permute.xlu2 %556  ;;  %p1188_p0 = scmp.ne.s32.totalorder %s1186_s21, %s1187_s27  ;;  %p1193_p4 = scmp.lt.s32.totalorder %s1191_s17, %s1187_s27 }
  0x98   : > { %460 = vst.msk [vmem:[%s402_s14 + $0x20] sm:$0xff] %vm455_vm2, %v451_v15 }
  0x99   : > { %461 = vst.msk [vmem:[%s402_s14 + $0x28] sm:$0xff] %vm455_vm2, %v452_v16  ;;  %p1189_p1 = pnand %p1188_p0, %p1382_p9  ;;  %p1194_p5 = por %p1193_p4, %p1192_p3 }
  0x9a   : > { %462 = vst.msk [vmem:[%s402_s14 + $0x30] sm:$0xff] %vm455_vm2, %v453_v17 }
  0x9b   : > { %463 = vst.msk [vmem:[%s402_s14 + $0x38] sm:$0xff] %vm455_vm2, %v454_v18  ;;  %p1190_p2 = pneg %p1189_p1 }
  0x9d   : > { %p1195_p6 = pnand %p1194_p5, %p1190_p2 }
  0x9f   : > { %1198 = shalt.err (!%p1195_p6)
}
  0xa0   : > { %971 = dma.vmem_to_hbm [thread:$0]  (%p1382_p9), %s664_s15, 1024, %s666_s16, %s637_s13, %s1295_s24, %s1295_s24, %s1296_s22   ;;  %v580_v20 = vpop.permute.xlu2 %579  ;;  %vm603_vm3 = vcmask 7168   ;;  %vm570_vm4 = vcmask 56320  }
  0xa1   : > { %v604_v21 = vsel %vm603_vm3, %v1460_v1, %v580_v20  ;;  %s1633_s9 = scalar_lea.vmem [#allocation11], %s1449_s23  ;;  %s704_s20 = scalar_lea.hbm %s1729_s5, %s1539_s12 }
  0xa2   : > { %s705_s25 = sshll.u32 %s1633_s9, 4  ;;  %s707_s8 = sshll.u32 %s704_s20, 4  ;;  %s706_s25 = int_to_ptr.vmem [resolvable:$true] %s705_s25  ;;  %s708_s8 = int_to_ptr.hbm [resolvable:$true] %s707_s8 }
  0xa3   : > { %s1213_s10 = sshra.s32 %s708_s8, 4  ;;  %s1219_s15 = scalar_lea.hbm %s1729_s5, 128  ;;  %s1214_s10 = int_to_ptr.hbm [resolvable:$true] %s1213_s10 }
  0xa4   : > { %s1215_s12 = scalar_lea.hbm %s1214_s10, 64  ;;  %p1220_p13 = scmp.lt.s32.totalorder %s1214_s10, %s1729_s5 }
  0xa5   : > { %p1216_p7 = scmp.ne.s32.totalorder %s1214_s10, %s1215_s12  ;;  %p1221_p0 = scmp.lt.s32.totalorder %s1219_s15, %s1215_s12 }
  0xa6   : > { %v551_v22 = vpop.permute.xlu1 %550  ;;  %v547_v23 = vpop.permute.xlu0 %546 }
  0xa7   : > { %v571_v24 = vsel %vm570_vm4, %v547_v23, %v1460_v1  ;;  %v573_v41 = vsel %vm570_vm4, %v551_v22, %v1458_v0  ;;  %p1217_p8 = pnand %p1216_p7, %p1382_p9  ;;  %p1222_p1 = por %p1221_p0, %p1220_p13 }
  0xa8   : > { %v612_v25 = vsub.f32 %v571_v24, %v604_v21  ;;  %v586_v26 = vpop.permute.xlu2 %585 }
  0xa9   : > { %v607_v28 = vsel %vm603_vm3, %v1467_v3, %v586_v26  ;;  %p1218_p10 = pneg %p1217_p8 }
  0xaa   : > { %v620_v27 = vmul.f32 5.0, %v612_v25 }
  0xab   : > { %p1223_p2 = pnand %p1222_p1, %p1218_p10 }
  0xac   : > { %628 = vst.msk [vmem:[%s1633_s9] sm:$0xff] %vm455_vm2, %v620_v27 }
  0xae   : > { %v553_v29 = vpop.permute.xlu1 %552  ;;  %v549_v30 = vpop.permute.xlu0 %548 }
  0xaf   : > { %v574_v31 = vsel %vm570_vm4, %v553_v29, %v1467_v3  ;;  %v572_v42 = vsel %vm570_vm4, %v549_v30, %v1469_v4 }
  0xb0   : > { %v615_v32 = vsub.f32 %v574_v31, %v607_v28  ;;  %v592_v33 = vpop.permute.xlu2 %591 }
  0xb1   : > { %v610_v34 = vsel %vm603_vm3, %v1478_v7, %v592_v33 }
  0xb2   : > { %v623_v1 = vmul.f32 5.0, %v615_v32 }
  0xb4   : > { %631 = vst.msk [vmem:[%s1633_s9 + $0x18] sm:$0xff] %vm455_vm2, %v623_v1 }
  0xb6   : > { %v561_v35 = vpop.permute.xlu1 %560  ;;  %v559_v36 = vpop.permute.xlu0 %558 }
  0xb7   : > { %v577_v37 = vsel %vm570_vm4, %v559_v36, %v1478_v7 }
  0xb8   : > { %v618_v38 = vsub.f32 %v577_v37, %v610_v34 }
  0xba   : > { %v626_v39 = vmul.f32 5.0, %v618_v38 }
  0xbc   : > { %634 = vst.msk [vmem:[%s1633_s9 + $0x30] sm:$0xff] %vm455_vm2, %v626_v39 }
  0xbe   : > { %v584_v3 = vpop.permute.xlu1 %583  ;;  %v582_v40 = vpop.permute.xlu0 %581 }
  0xbf   : > { %v606_v43 = vsel %vm603_vm3, %v1458_v0, %v584_v3  ;;  %v605_v44 = vsel %vm603_vm3, %v1469_v4, %v582_v40  ;;  %v575_v0 = vsel %vm570_vm4, %v1574_v12, %v1462_v2  ;;  %v576_v4 = vsel %vm570_vm4, %v557_v19, %v1471_v5 }
  0xc0   : > { %v614_v45 = vsub.f32 %v573_v41, %v606_v43  ;;  %v613_v7 = vsub.f32 %v572_v42, %v605_v44 }
  0xc2   : > { %v622_v46 = vmul.f32 5.0, %v614_v45  ;;  %v621_v47 = vmul.f32 5.0, %v613_v7 }
  0xc4   : > { %630 = vst.msk [vmem:[%s1633_s9 + $0x10] sm:$0xff] %vm455_vm2, %v622_v46 }
  0xc5   : > { %629 = vst.msk [vmem:[%s1633_s9 + $0x8] sm:$0xff] %vm455_vm2, %v621_v47 }
  0xc6   : > { %v590_v48 = vpop.permute.xlu1 %589  ;;  %v588_v49 = vpop.permute.xlu0 %587 }
  0xc7   : > { %v609_v50 = vsel %vm603_vm3, %v1471_v5, %v590_v48  ;;  %v608_v51 = vsel %vm603_vm3, %v1462_v2, %v588_v49  ;;  %v578_v5 = vsel %vm570_vm4, %v561_v35, %v1476_v6 }
  0xc8   : > { %v617_v52 = vsub.f32 %v576_v4, %v609_v50  ;;  %v616_v53 = vsub.f32 %v575_v0, %v608_v51 }
  0xca   : > { %v625_v54 = vmul.f32 5.0, %v617_v52  ;;  %v624_v55 = vmul.f32 5.0, %v616_v53 }
  0xcc   : > { %633 = vst.msk [vmem:[%s1633_s9 + $0x28] sm:$0xff] %vm455_vm2, %v625_v54 }
  0xcd   : > { %632 = vst.msk [vmem:[%s1633_s9 + $0x20] sm:$0xff] %vm455_vm2, %v624_v55 }
  0xce   : > { %v594_v56 = vpop.permute.xlu0 %593 }
  0xcf   : > { %v611_v2 = vsel %vm603_vm3, %v1476_v6, %v594_v56 }
  0xd0   : > { %v619_v57 = vsub.f32 %v578_v5, %v611_v2 }
  0xd2   : > { %v627_v58 = vmul.f32 5.0, %v619_v57 }
  0xd4   : > { %635 = vst.msk [vmem:[%s1633_s9 + $0x38] sm:$0xff] %vm455_vm2, %v627_v58 }
  0xd5   : > { %1226 = shalt.err (!%p1223_p2)
}
  0xd6   : > { %973 = dma.vmem_to_hbm [thread:$0]  (%p1382_p9), %s706_s25, 1024, %s708_s8, %s1584_s28, %s1295_s24, %s1295_s24, %s1296_s22  }
  0xd7 PF: > { %s1752_s27 = sld [smem:[#allocation18_spill]]  ;;  %s722_s11 = sand.u32 1, %s1269_s18  }
  0xd8   : > { %p988_p3 = pnand %p929_p12, %p1391_p11  ;;  %s723_s26 = scalar_lea.sflag [#allocation4], %s722_s11 }
  0xda   : > { %p989_p4 = pneg %p988_p3 }
  0xdc   : > { %1260 = dma.done.wait (%p989_p4), %s723_s26, 1024  }
  0xdd   : > { %1262 = vsyncadd (%p989_p4), %s723_s26, 4294966272  ;;  %s1753_s17 = sadd.s32 4294967294, %s1752_s27  }
  0xde   : > { %s732_s6 = sand.u32 1, %s1753_s17  }
  0xdf   : > { %s733_s29 = scalar_lea.sflag [#allocation10], %s732_s6 }
  0xe0   : > { %1264 = dma.done.wait (%p989_p4), %s733_s29, 2048  }
  0xe1   : > { %1266 = vsyncadd (%p989_p4), %s733_s29, 4294965248  ;;  %s28_s23 = sadd.s32 1, %s1752_s27   ;;  %s1754_s28 = sld [smem:[#allocation16_spill]] }
  0xe2   : > { %p25_p9 = scmp.ge.s32.totalorder %s28_s23, 4   ;;  %s1755_s20 = sld [smem:[#allocation20_spill]] }
  0xe3   : > { %s1756_s21 = sld [smem:[#allocation17_spill]]  ;;  %s1758_s18 = smov %s1273_s19 }
  0xe4   : > { %s1757_s22 = sld [smem:[#allocation19_spill]]  ;;  %27 = sbr.rel (!%p25_p9) target bundleno = 12 (0xc), region = 133 }
  0xe7   : > { %s1759_s19 = smov %s1754_s28 }
  0xe9   :  { %749 = vsyncpa [#allocation3], 1 }
  0xea   :  { %751 = vsyncpa [#allocation3 + $0x1], 1 }
  0xeb   :  { %752 = vsyncpa [#allocation6], 1 }
  0xec   :  { %754 = vsyncpa [#allocation6 + $0x1], 1 }
  0xed   :  { %755 = vsyncpa [#allocation4], 1 }
  0xee   :  { %757 = vsyncpa [#allocation4 + $0x1], 1 }
  0xef   :  { %758 = vsyncpa [#allocation10], 1 }
  0xf0   :  { %760 = vsyncpa [#allocation10 + $0x1], 1 }

</bundles_post_ra>
